<compile_context>
chip_gen: v5e
topology: v5e:2x2
jax: 0.10.0
libtpu: 0.0.40
codegen_flags: <defaults>
</compile_context>

<pallas_src>
import math
import functools

import jax
import jax.numpy as jnp
from jax.experimental import pallas as pl
from jax.experimental.pallas import tpu as pltpu


def _pick_tile(n: int, target: int, align: int) -> int:
    """Largest multiple of `align` that divides n and is <= min(target, n).

    Falls back to the full dimension, which is always a legal block size.
    """
    cap = min(target, n)
    t = (cap // align) * align
    while t >= align:
        if n % t == 0:
            return t
        t -= align
    return n


def cheb_conv_kernel(lr_ref, li_ref, yt_ref, yb_ref, xcat_ref, out_ref, acc_ref):
    """One (row-tile, k-tile) step of  out = L_r @ Ytop + L_i @ Ybot + Xcat.

    lr_ref, li_ref : (TM, TK)  tiles of L_real / L_imag        (streamed, double-buffered)
    yt_ref, yb_ref : (TK, 2C)  tiles of [Yr | Yi] and [-Yi | Yr]
    xcat_ref       : (TM, 2C)  residual [X_real | X_imag] row tile
    out_ref        : (TM, 2C)  lane-dense output slab [real | imag]
    acc_ref        : (TM, 2C)  f32 accumulator scratch (lives across the k axis)
    """
    k = pl.program_id(1)

    @pl.when(k == 0)
    def _init():
        acc_ref[...] = jnp.zeros_like(acc_ref)

    acc_ref[...] += (
        jnp.dot(lr_ref[...], yt_ref[...], preferred_element_type=jnp.float32)
        + jnp.dot(li_ref[...], yb_ref[...], preferred_element_type=jnp.float32)
    )

    @pl.when(k == pl.num_programs(1) - 1)
    def _finalize():
        out_ref[...] = (acc_ref[...] + xcat_ref[...]).astype(out_ref.dtype)


@functools.partial(jax.jit, static_argnames=("tm_target", "tk_target"))
def cheb_conv(L_real, L_imag, X_real, X_imag, weight, *, tm_target=512, tk_target=512):
    N, C = X_real.shape
    assert L_real.shape == (N, N) and L_imag.shape == (N, N)
    assert weight.shape == (C, C), "residual add in forward() requires in_c == out_c"

    f32 = jnp.float32
    L_real = L_real.astype(f32)
    L_imag = L_imag.astype(f32)
    X_real = X_real.astype(f32)
    X_imag = X_imag.astype(f32)
    weight = weight.astype(f32)

    # Distributivity + associativity: fold W into the (small) X side so the
    # heavy L-stage is a single wide matmul per Laplacian.
    Yr = X_real @ weight                                  # (N, C)   tiny
    Yi = X_imag @ weight                                  # (N, C)   tiny
    Ytop = jnp.concatenate([Yr, Yi], axis=1)              # (N, 2C)
    Ybot = jnp.concatenate([-Yi, Yr], axis=1)             # (N, 2C)
    Xcat = jnp.concatenate([X_real, X_imag], axis=1)      # (N, 2C)  residual

    TM = _pick_tile(N, tm_target, 8)      # sublane-aligned row tile
    TK = _pick_tile(N, tk_target, 128)    # lane-aligned contraction tile
    C2 = 2 * C
    grid = (N // TM, N // TK)

    # Advisory cost estimate: 2 MXU matmuls of (N x N x 2C) plus the epilogue.
    flops = 2 * 2 * N * N * C2
    bytes_accessed = 4 * (2 * N * N          # L_real + L_imag (dominant)
                          + 2 * N * C2 * grid[0]  # Ytop/Ybot re-read per row tile
                          + 2 * N * C2)      # Xcat + output

    out = pl.pallas_call(
        cheb_conv_kernel,
        out_shape=jax.ShapeDtypeStruct((N, C2), f32),
        grid_spec=pltpu.PrefetchScalarGridSpec(
            num_scalar_prefetch=0,
            grid=grid,
            in_specs=[
                pl.BlockSpec((TM, TK), lambda i, k: (i, k)),   # L_real tile
                pl.BlockSpec((TM, TK), lambda i, k: (i, k)),   # L_imag tile
                pl.BlockSpec((TK, C2), lambda i, k: (k, 0)),   # [Yr | Yi]
                pl.BlockSpec((TK, C2), lambda i, k: (k, 0)),   # [-Yi | Yr]
                pl.BlockSpec((TM, C2), lambda i, k: (i, 0)),   # residual [Xr | Xi]
            ],
            out_specs=pl.BlockSpec((TM, C2), lambda i, k: (i, 0)),
            scratch_shapes=[pltpu.VMEM((TM, C2), f32)],
        ),
        compiler_params=pltpu.CompilerParams(
            # Row tiles are independent (shards across v7x's 2 TCs); k is a reduction.
            dimension_semantics=("parallel", "arbitrary"),
            vmem_limit_bytes=32 * 1024 * 1024,  # safe on v5e/v6e/v7x; tiles use ~6 MiB
        ),
        cost_estimate=pl.CostEstimate(
            flops=flops, transcendentals=0, bytes_accessed=bytes_accessed),
    )(L_real, L_imag, Ytop, Ybot, Xcat)

    # Split the lane-dense slab back into (real, imag).
    return out[:, :C], out[:, C:]


def reference(L_real, L_imag, X_real, X_imag, weight):
    real = (L_real @ X_real) @ weight + (-(L_imag @ X_imag)) @ weight
    imag = (L_imag @ X_real) @ weight + (L_real @ X_imag) @ weight
    return real + X_real, imag + X_imag


if __name__ == "__main__":
    base_key = jax.random.PRNGKey(0)

    def run_case(N, C, case_idx):
        key = jax.random.fold_in(base_key, case_idx)
        k_lr, k_li, k_xr, k_xi, k_w = jax.random.split(key, 5)
        L_real = jax.random.normal(k_lr, (N, N), dtype=jnp.float32) / math.sqrt(N)
        L_imag = jax.random.normal(k_li, (N, N), dtype=jnp.float32) / math.sqrt(N)
        X_real = jax.random.normal(k_xr, (N, C), dtype=jnp.float32)
        X_imag = jax.random.normal(k_xi, (N, C), dtype=jnp.float32)
        # Deterministic xavier_uniform_-style init for weight [in_c, out_c].
        bound = math.sqrt(6.0 / (C + C))
        weight = jax.random.uniform(k_w, (C, C), dtype=jnp.float32,
                                    minval=-bound, maxval=bound)
        # bias param exists in __init__ (zeros, [1, out_c]) but is never used
        # in forward(), so it is intentionally omitted.

        out_real, out_imag = cheb_conv(L_real, L_imag, X_real, X_imag, weight)
        jax.block_until_ready((out_real, out_imag))

        ref_real, ref_imag = reference(L_real, L_imag, X_real, X_imag, weight)
        assert jnp.allclose(out_real, ref_real, atol=1e-3, rtol=1e-3), f"real mismatch N={N}"
        assert jnp.allclose(out_imag, ref_imag, atol=1e-3, rtol=1e-3), f"imag mismatch N={N}"

    # Small shape consistent with the module (K=1 path), single grid step.
    run_case(64, 32, 0)
    # Larger graph to exercise the (row, k) grid with 512-wide double-buffered L tiles.
    run_case(1024, 32, 1)

    print("KERNEL_OK")
</pallas_src>

<mosaic_0001>
module attributes {stable_mosaic.version = 11 : i64} {
  func.func @cheb_conv_kernel(%arg0: i32, %arg1: i32, %arg2: memref<64x64xf32, #tpu.memory_space<vmem>>, %arg3: memref<64x64xf32, #tpu.memory_space<vmem>>, %arg4: memref<64x64xf32, #tpu.memory_space<vmem>>, %arg5: memref<64x64xf32, #tpu.memory_space<vmem>>, %arg6: memref<64x64xf32, #tpu.memory_space<vmem>>, %arg7: memref<64x64xf32, #tpu.memory_space<vmem>>, %arg8: memref<64x64xf32, #tpu.memory_space<vmem>>) attributes {dimension_semantics = [#tpu.dimension_semantics<parallel>, #tpu.dimension_semantics<arbitrary>], iteration_bounds = array<i64: 1, 1>, scalar_prefetch = 0 : i64, scratch_operands = 1 : i64, tpu.core_type = #tpu.core_type<tc>, window_params = [{transform_indices = @transform_0, window_bounds = array<i64: 64, 64>}, {transform_indices = @transform_1, window_bounds = array<i64: 64, 64>}, {transform_indices = @transform_2, window_bounds = array<i64: 64, 64>}, {transform_indices = @transform_3, window_bounds = array<i64: 64, 64>}, {transform_indices = @transform_4, window_bounds = array<i64: 64, 64>}, {transform_indices = @transform_5, window_bounds = array<i64: 64, 64>}]} {
    %c0_i32 = arith.constant 0 : i32
    %0 = arith.cmpi eq, %arg1, %c0_i32 : i32
    %1 = arith.extui %0 : i1 to i32
    %c0_i32_0 = arith.constant 0 : i32
    %2 = arith.cmpi ne, %1, %c0_i32_0 : i32
    scf.if %2 {
      %cst_15 = arith.constant 0.000000e+00 : f32
      %16 = vector.broadcast %cst_15 : f32 to vector<64x64xf32>
      %c0_16 = arith.constant 0 : index
      %c0_17 = arith.constant 0 : index
      %17 = vector.load %arg8[%c0_16, %c0_17] : memref<64x64xf32, #tpu.memory_space<vmem>>, vector<64x64xf32>
      tpu.vector_store %arg8[%c0_16, %c0_17], %16 {strides = array<i32>} : memref<64x64xf32, #tpu.memory_space<vmem>>, vector<64x64xf32>,
    } else {
    }
    %c0 = arith.constant 0 : index
    %c0_1 = arith.constant 0 : index
    %3 = vector.load %arg8[%c0, %c0_1] : memref<64x64xf32, #tpu.memory_space<vmem>>, vector<64x64xf32>
    %c0_2 = arith.constant 0 : index
    %c0_3 = arith.constant 0 : index
    %4 = vector.load %arg2[%c0_2, %c0_3] : memref<64x64xf32, #tpu.memory_space<vmem>>, vector<64x64xf32>
    %c0_4 = arith.constant 0 : index
    %c0_5 = arith.constant 0 : index
    %5 = vector.load %arg4[%c0_4, %c0_5] : memref<64x64xf32, #tpu.memory_space<vmem>>, vector<64x64xf32>
    %cst = arith.constant dense<0.000000e+00> : vector<64x64xf32>
    %6 = tpu.matmul %4, %5, %cst {dimension_numbers = #tpu.dot_dimension_numbers<[1], [0], [0], [1], [0, 0, 1, 1], [], []>} : vector<64x64xf32>, vector<64x64xf32>, vector<64x64xf32> -> vector<64x64xf32>
    %c0_6 = arith.constant 0 : index
    %c0_7 = arith.constant 0 : index
    %7 = vector.load %arg3[%c0_6, %c0_7] : memref<64x64xf32, #tpu.memory_space<vmem>>, vector<64x64xf32>
    %c0_8 = arith.constant 0 : index
    %c0_9 = arith.constant 0 : index
    %8 = vector.load %arg5[%c0_8, %c0_9] : memref<64x64xf32, #tpu.memory_space<vmem>>, vector<64x64xf32>
    %cst_10 = arith.constant dense<0.000000e+00> : vector<64x64xf32>
    %9 = tpu.matmul %7, %8, %cst_10 {dimension_numbers = #tpu.dot_dimension_numbers<[1], [0], [0], [1], [0, 0, 1, 1], [], []>} : vector<64x64xf32>, vector<64x64xf32>, vector<64x64xf32> -> vector<64x64xf32>
    %10 = arith.addf %6, %9 : vector<64x64xf32>
    %11 = arith.addf %3, %10 : vector<64x64xf32>
    %c0_11 = arith.constant 0 : index
    %c0_12 = arith.constant 0 : index
    %12 = vector.load %arg8[%c0_11, %c0_12] : memref<64x64xf32, #tpu.memory_space<vmem>>, vector<64x64xf32>
    tpu.vector_store %arg8[%c0_11, %c0_12], %11 {strides = array<i32>} : memref<64x64xf32, #tpu.memory_space<vmem>>, vector<64x64xf32>,
    %c0_i32_13 = arith.constant 0 : i32
    %13 = arith.cmpi eq, %arg1, %c0_i32_13 : i32
    %14 = arith.extui %13 : i1 to i32
    %c0_i32_14 = arith.constant 0 : i32
    %15 = arith.cmpi ne, %14, %c0_i32_14 : i32
    scf.if %15 {
      %c0_15 = arith.constant 0 : index
      %c0_16 = arith.constant 0 : index
      %16 = vector.load %arg8[%c0_15, %c0_16] : memref<64x64xf32, #tpu.memory_space<vmem>>, vector<64x64xf32>
      %c0_17 = arith.constant 0 : index
      %c0_18 = arith.constant 0 : index
      %17 = vector.load %arg6[%c0_17, %c0_18] : memref<64x64xf32, #tpu.memory_space<vmem>>, vector<64x64xf32>
      %18 = arith.addf %16, %17 : vector<64x64xf32>
      %c0_19 = arith.constant 0 : index
      %c0_20 = arith.constant 0 : index
      %19 = vector.load %arg7[%c0_19, %c0_20] : memref<64x64xf32, #tpu.memory_space<vmem>>, vector<64x64xf32>
      tpu.vector_store %arg7[%c0_19, %c0_20], %18 {strides = array<i32>} : memref<64x64xf32, #tpu.memory_space<vmem>>, vector<64x64xf32>,
    } else {
    }
    return
  }
  func.func @transform_0(%arg0: i32, %arg1: i32) -> (i32, i32) {
    %c0_i32 = arith.constant 0 : i32
    return %arg0, %arg1 : i32, i32
  }
  func.func @transform_1(%arg0: i32, %arg1: i32) -> (i32, i32) {
    %c0_i32 = arith.constant 0 : i32
    return %arg0, %arg1 : i32, i32
  }
  func.func @transform_2(%arg0: i32, %arg1: i32) -> (i32, i32) {
    %c0_i32 = arith.constant 0 : i32
    %c0_i32_0 = arith.constant 0 : i32
    return %arg1, %c0_i32 : i32, i32
  }
  func.func @transform_3(%arg0: i32, %arg1: i32) -> (i32, i32) {
    %c0_i32 = arith.constant 0 : i32
    %c0_i32_0 = arith.constant 0 : i32
    return %arg1, %c0_i32 : i32, i32
  }
  func.func @transform_4(%arg0: i32, %arg1: i32) -> (i32, i32) {
    %c0_i32 = arith.constant 0 : i32
    %c0_i32_0 = arith.constant 0 : i32
    return %arg0, %c0_i32 : i32, i32
  }
  func.func @transform_5(%arg0: i32, %arg1: i32) -> (i32, i32) {
    %c0_i32 = arith.constant 0 : i32
    %c0_i32_0 = arith.constant 0 : i32
    return %arg0, %c0_i32 : i32, i32
  }
}

</mosaic_0001>

<bundles_post_ra>
// kernel: cheb_conv.1
= control target key start
LH: loop header
LB: loop body
LE: loop exit
PB: predicated region body
PF: predicated region fallthrough
CT: control target
= control target key end

     0   :  { %vm24_vm0 = vcmask 523264   ;;  %v292_v32 = vmov 0.0   ;;  %s507_s3 = inlined_call_operand.vmem [shape: f32[64,64], index: 3, kind: input, shape index: {}]   ;;  %s508_s2 = inlined_call_operand.vmem [shape: f32[64,64], index: 2, kind: input, shape index: {}]   ;;  %s509_s1 = inlined_call_operand.vmem [shape: f32[64,64], index: 1, kind: input, shape index: {}]   ;;  %s510_s0 = inlined_call_operand.vmem [shape: f32[64,64], index: 0, kind: input, shape index: {}]   ;;  %s511_s4 = inlined_call_operand.vmem [shape: f32[64,64], index: 4, kind: input, shape index: {}]   ;;  %s512_s5 = inlined_call_operand.vmem [shape: f32[64,64], index: 5, kind: output, shape index: {}]  }
   0x1   :  { %v72_v0 = vld [vmem:[%s507_s3 + $0x38] sm:$0xff]  ;;  %v71_v2 = vld [vmem:[%s507_s3 + $0x30] sm:$0xff]  ;;  %v70_v4 = vld [vmem:[%s507_s3 + $0x28] sm:$0xff]  ;;  %25 = vst.msk [vmem:[#allocation2] sm:$0xff] %vm24_vm0, %v292_v32 }
   0x2   :  { %v56_v1 = vld [vmem:[%s508_s2 + $0x38] sm:$0xff]  ;;  %275 = vmatpush.msra.mxu2 %v72_v0  ;;  %v55_v3 = vld [vmem:[%s508_s2 + $0x30] sm:$0xff]  ;;  %v54_v5 = vld [vmem:[%s508_s2 + $0x28] sm:$0xff]  ;;  %106 = vmatpush.msra.mxu0 %v72_v0  ;;  %26 = vst.msk [vmem:[#allocation2 + $0x8] sm:$0xff] %vm24_vm0, %v292_v32 }
   0x3   :  { %283 = vmatpush.msra.mxu3 %v56_v1  ;;  %171 = vmatpush.msra.mxu1 %v56_v1  ;;  %v69_v6 = vld [vmem:[%s507_s3 + $0x20] sm:$0xff]  ;;  %v68_v8 = vld [vmem:[%s507_s3 + $0x18] sm:$0xff]  ;;  %v67_v10 = vld [vmem:[%s507_s3 + $0x10] sm:$0xff]  ;;  %27 = vst.msk [vmem:[#allocation2 + $0x10] sm:$0xff] %vm24_vm0, %v292_v32 }
   0x4   :  { %276 = vmatpush.msra.mxu2 %v71_v2  ;;  %v53_v7 = vld [vmem:[%s508_s2 + $0x20] sm:$0xff]  ;;  %107 = vmatpush.msra.mxu0 %v71_v2  ;;  %v52_v9 = vld [vmem:[%s508_s2 + $0x18] sm:$0xff]  ;;  %v51_v11 = vld [vmem:[%s508_s2 + $0x10] sm:$0xff]  ;;  %28 = vst.msk [vmem:[#allocation2 + $0x18] sm:$0xff] %vm24_vm0, %v292_v32 }
   0x5   :  { %284 = vmatpush.msra.mxu3 %v55_v3  ;;  %172 = vmatpush.msra.mxu1 %v55_v3  ;;  %v66_v12 = vld [vmem:[%s507_s3 + $0x8] sm:$0xff]  ;;  %v65_v14 = vld [vmem:[%s507_s3] sm:$0xff]  ;;  %v63_v24 = vld [vmem:[%s509_s1 + $0x30] sm:$0xff]  ;;  %29 = vst.msk [vmem:[#allocation2 + $0x20] sm:$0xff] %vm24_vm0, %v292_v32 }
   0x6   :  { %277 = vmatpush.msra.mxu2 %v70_v4  ;;  %108 = vmatpush.msra.mxu0 %v70_v4  ;;  %v50_v13 = vld [vmem:[%s508_s2 + $0x8] sm:$0xff]  ;;  %v49_v15 = vld [vmem:[%s508_s2] sm:$0xff]  ;;  %v47_v25 = vld [vmem:[%s510_s0 + $0x30] sm:$0xff]  ;;  %30 = vst.msk [vmem:[#allocation2 + $0x28] sm:$0xff] %vm24_vm0, %v292_v32 }
   0x7   :  { %285 = vmatpush.msra.mxu3 %v54_v5  ;;  %173 = vmatpush.msra.mxu1 %v54_v5  ;;  %v61_v16 = vld [vmem:[%s509_s1 + $0x20] sm:$0xff]  ;;  %v62_v20 = vld [vmem:[%s509_s1 + $0x28] sm:$0xff]  ;;  %v59_v26 = vld [vmem:[%s509_s1 + $0x10] sm:$0xff]  ;;  %31 = vst.msk [vmem:[#allocation2 + $0x30] sm:$0xff] %vm24_vm0, %v292_v32 }
   0x8   :  { %278 = vmatpush.msra.mxu2 %v69_v6  ;;  %109 = vmatpush.msra.mxu0 %v69_v6  ;;  %v45_v17 = vld [vmem:[%s510_s0 + $0x20] sm:$0xff]  ;;  %v46_v21 = vld [vmem:[%s510_s0 + $0x28] sm:$0xff]  ;;  %v43_v27 = vld [vmem:[%s510_s0 + $0x10] sm:$0xff]  ;;  %32 = vst.msk [vmem:[#allocation2 + $0x38] sm:$0xff] %vm24_vm0, %v292_v32 }
   0x9   :  { %286 = vmatpush.msra.mxu3 %v53_v7  ;;  %174 = vmatpush.msra.mxu1 %v53_v7  ;;  %v57_v18 = vld [vmem:[%s509_s1] sm:$0xff]  ;;  %v58_v22 = vld [vmem:[%s509_s1 + $0x8] sm:$0xff]  ;;  %v64_v28 = vld [vmem:[%s509_s1 + $0x38] sm:$0xff] }
   0xa   :  { %279 = vmatpush.msra.mxu2 %v68_v8  ;;  %110 = vmatpush.msra.mxu0 %v68_v8  ;;  %v41_v19 = vld [vmem:[%s510_s0] sm:$0xff]  ;;  %v42_v23 = vld [vmem:[%s510_s0 + $0x8] sm:$0xff]  ;;  %v48_v29 = vld [vmem:[%s510_s0 + $0x38] sm:$0xff] }
   0xb   :  { %287 = vmatpush.msra.mxu3 %v52_v9  ;;  %175 = vmatpush.msra.mxu1 %v52_v9  ;;  %v60_v30 = vld [vmem:[%s509_s1 + $0x18] sm:$0xff]  ;;  %v33_v34 = vld [vmem:[#allocation2] sm:$0xff]  ;;  %v34_v44 = vld [vmem:[#allocation2 + $0x8] sm:$0xff] }
   0xc   :  { %280 = vmatpush.msra.mxu2 %v67_v10  ;;  %111 = vmatpush.msra.mxu0 %v67_v10  ;;  %v44_v31 = vld [vmem:[%s510_s0 + $0x18] sm:$0xff]  ;;  %v37_v39 = vld [vmem:[#allocation2 + $0x20] sm:$0xff]  ;;  %v35_v59 = vld [vmem:[#allocation2 + $0x10] sm:$0xff] }
   0xd   :  { %288 = vmatpush.msra.mxu3 %v51_v11  ;;  %176 = vmatpush.msra.mxu1 %v51_v11  ;;  %v231_v47 = vld [vmem:[%s511_s4] sm:$0xff]  ;;  %v38_v51 = vld [vmem:[#allocation2 + $0x28] sm:$0xff]  ;;  %v36_v11 = vld [vmem:[#allocation2 + $0x18] sm:$0xff] }
   0xe   :  { %281 = vmatpush.msra.mxu2 %v66_v12  ;;  %112 = vmatpush.msra.mxu0 %v66_v12  ;;  %v235_v55 = vld [vmem:[%s511_s4 + $0x20] sm:$0xff]  ;;  %v232_v63 = vld [vmem:[%s511_s4 + $0x8] sm:$0xff]  ;;  %v39_v3 = vld [vmem:[#allocation2 + $0x30] sm:$0xff] }
   0xf   :  { %289 = vmatpush.msra.mxu3 %v50_v13  ;;  %177 = vmatpush.msra.mxu1 %v50_v13  ;;  %v236_v7 = vld [vmem:[%s511_s4 + $0x28] sm:$0xff] }
  0x10   :  { %282 = vmatpush.msra.mxu2 %v65_v14  ;;  %113 = vmatpush.msra.mxu0 %v65_v14 }
  0x11   :  { %290 = vmatpush.msra.mxu3 %v49_v15  ;;  %263 = vmatmul.msk.f32.vlgmr.msra.gmra.mxu2 %vm24_vm0, %v61_v16 }
  0x12   :  { %271 = vmatmul.msk.f32.vlgmr.msra.gmra.mxu3 %vm24_vm0, %v45_v17  ;;  %178 = vmatpush.msra.mxu1 %v49_v15  ;;  %v233_v15 = vld [vmem:[%s511_s4 + $0x10] sm:$0xff] }
  0x13   :  { %259 = vmatmul.msk.f32.vlgmr.msra.gmra.mxu0 %vm24_vm0, %v57_v18  ;;  %267 = vmatmul.msk.f32.vlgmr.msra.gmra.mxu1 %vm24_vm0, %v41_v19  ;;  %v40_v19 = vld [vmem:[#allocation2 + $0x38] sm:$0xff] }
  0x19   :  { %264 = vmatmul.msk.f32.gmra.mxu2 %vm24_vm0, %v62_v20 }
  0x1a   :  { %272 = vmatmul.msk.f32.gmra.mxu3 %vm24_vm0, %v46_v21 }
  0x1b   :  { %260 = vmatmul.msk.f32.gmra.mxu0 %vm24_vm0, %v58_v22  ;;  %268 = vmatmul.msk.f32.gmra.mxu1 %vm24_vm0, %v42_v23  ;;  %v237_v23 = vld [vmem:[%s511_s4 + $0x30] sm:$0xff] }
  0x21   :  { %265 = vmatmul.msk.f32.gmra.mxu2 %vm24_vm0, %v63_v24 }
  0x22   :  { %273 = vmatmul.msk.f32.gmra.mxu3 %vm24_vm0, %v47_v25 }
  0x23   :  { %261 = vmatmul.msk.f32.gmra.mxu0 %vm24_vm0, %v59_v26  ;;  %269 = vmatmul.msk.f32.gmra.mxu1 %vm24_vm0, %v43_v27  ;;  %v234_v27 = vld [vmem:[%s511_s4 + $0x18] sm:$0xff] }
  0x29   :  { %266 = vmatmul.msk.f32.gmra.mxu2 %vm24_vm0, %v64_v28 }
  0x2a   :  { %274 = vmatmul.msk.f32.gmra.mxu3 %vm24_vm0, %v48_v29 }
  0x2b   :  { %262 = vmatmul.msk.f32.gmra.mxu0 %vm24_vm0, %v60_v30  ;;  %270 = vmatmul.msk.f32.gmra.mxu1 %vm24_vm0, %v44_v31  ;;  %v238_v30 = vld [vmem:[%s511_s4 + $0x38] sm:$0xff] }
  0x90   :  { %v115_v33 = vpop.f32.mrf.mxu0  ;;  %v180_v35 = vpop.f32.mrf.mxu1 }
  0x91   :  { %v181_v36 = vadd.f32 %v180_v35, %v115_v33 }
  0x93   :  { %v204_v37 = vadd.f32 %v181_v36, %v33_v34 }
  0x94   :  { %v127_v38 = vpop.f32.mrf.mxu2 }
  0x95   :  { %v192_v40 = vpop.f32.mrf.mxu3  ;;  %212 = vst.msk [vmem:[#allocation2] sm:$0xff] %vm24_vm0, %v204_v37 }
  0x96   :  { %v193_v41 = vadd.f32 %v192_v40, %v127_v38 }
  0x98   :  { %v208_v42 = vadd.f32 %v193_v41, %v37_v39  ;;  %v118_v43 = vpop.f32.mrf.mxu0  ;;  %v183_v45 = vpop.f32.mrf.mxu1 }
  0x99   :  { %v184_v46 = vadd.f32 %v183_v45, %v118_v43 }
  0x9a   :  { %216 = vst.msk [vmem:[#allocation2 + $0x20] sm:$0xff] %vm24_vm0, %v208_v42 }
  0x9b   :  { %v205_v48 = vadd.f32 %v184_v46, %v34_v44 }
  0x9c   :  { %v223_v49 = vld [vmem:[#allocation2] sm:$0xff]  ;;  %v130_v50 = vpop.f32.mrf.mxu2 }
  0x9d   :  { %v195_v52 = vpop.f32.mrf.mxu3  ;;  %v239_v53 = vadd.f32 %v231_v47, %v223_v49  ;;  %213 = vst.msk [vmem:[#allocation2 + $0x8] sm:$0xff] %vm24_vm0, %v205_v48 }
  0x9e   :  { %v196_v54 = vadd.f32 %v195_v52, %v130_v50 }
  0x9f   :  { %247 = vst.msk [vmem:[%s512_s5] sm:$0xff] %vm24_vm0, %v239_v53 }
  0xa0   :  { %v209_v56 = vadd.f32 %v196_v54, %v38_v51  ;;  %v121_v58 = vpop.f32.mrf.mxu0  ;;  %v186_v60 = vpop.f32.mrf.mxu1 }
  0xa1   :  { %v227_v57 = vld [vmem:[#allocation2 + $0x20] sm:$0xff]  ;;  %v187_v62 = vadd.f32 %v186_v60, %v121_v58 }
  0xa2   :  { %v243_v61 = vadd.f32 %v235_v55, %v227_v57  ;;  %217 = vst.msk [vmem:[#allocation2 + $0x28] sm:$0xff] %vm24_vm0, %v209_v56 }
  0xa3   :  { %v206_v0 = vadd.f32 %v187_v62, %v35_v59 }
  0xa4   :  { %251 = vst.msk [vmem:[%s512_s5 + $0x20] sm:$0xff] %vm24_vm0, %v243_v61  ;;  %v224_v1 = vld [vmem:[#allocation2 + $0x8] sm:$0xff]  ;;  %v133_v2 = vpop.f32.mrf.mxu2 }
  0xa5   :  { %v198_v4 = vpop.f32.mrf.mxu3  ;;  %v240_v5 = vadd.f32 %v232_v63, %v224_v1  ;;  %214 = vst.msk [vmem:[#allocation2 + $0x10] sm:$0xff] %vm24_vm0, %v206_v0 }
  0xa6   :  { %v199_v6 = vadd.f32 %v198_v4, %v133_v2 }
  0xa7   :  { %248 = vst.msk [vmem:[%s512_s5 + $0x8] sm:$0xff] %vm24_vm0, %v240_v5 }
  0xa8   :  { %v210_v8 = vadd.f32 %v199_v6, %v39_v3  ;;  %v124_v10 = vpop.f32.mrf.mxu0  ;;  %v189_v12 = vpop.f32.mrf.mxu1 }
  0xa9   :  { %v228_v9 = vld [vmem:[#allocation2 + $0x28] sm:$0xff]  ;;  %v190_v14 = vadd.f32 %v189_v12, %v124_v10 }
  0xaa   :  { %v244_v13 = vadd.f32 %v236_v7, %v228_v9  ;;  %218 = vst.msk [vmem:[#allocation2 + $0x30] sm:$0xff] %vm24_vm0, %v210_v8 }
  0xab   :  { %v207_v16 = vadd.f32 %v190_v14, %v36_v11 }
  0xac   :  { %252 = vst.msk [vmem:[%s512_s5 + $0x28] sm:$0xff] %vm24_vm0, %v244_v13  ;;  %v225_v17 = vld [vmem:[#allocation2 + $0x10] sm:$0xff]  ;;  %v136_v18 = vpop.f32.mrf.mxu2 }
  0xad   :  { %v201_v20 = vpop.f32.mrf.mxu3  ;;  %v241_v21 = vadd.f32 %v233_v15, %v225_v17  ;;  %215 = vst.msk [vmem:[#allocation2 + $0x18] sm:$0xff] %vm24_vm0, %v207_v16 }
  0xae   :  { %v202_v22 = vadd.f32 %v201_v20, %v136_v18 }
  0xaf   :  { %249 = vst.msk [vmem:[%s512_s5 + $0x10] sm:$0xff] %vm24_vm0, %v241_v21 }
  0xb0   :  { %v211_v24 = vadd.f32 %v202_v22, %v40_v19 }
  0xb1   :  { %v229_v25 = vld [vmem:[#allocation2 + $0x30] sm:$0xff] }
  0xb2   :  { %v245_v26 = vadd.f32 %v237_v23, %v229_v25  ;;  %219 = vst.msk [vmem:[#allocation2 + $0x38] sm:$0xff] %vm24_vm0, %v211_v24 }
  0xb4   :  { %253 = vst.msk [vmem:[%s512_s5 + $0x30] sm:$0xff] %vm24_vm0, %v245_v26  ;;  %v226_v28 = vld [vmem:[#allocation2 + $0x18] sm:$0xff] }
  0xb5   :  { %v242_v29 = vadd.f32 %v234_v27, %v226_v28 }
  0xb7   :  { %250 = vst.msk [vmem:[%s512_s5 + $0x18] sm:$0xff] %vm24_vm0, %v242_v29 }
  0xb9   :  { %v230_v31 = vld [vmem:[#allocation2 + $0x38] sm:$0xff] }
  0xba   :  { %v246_v32 = vadd.f32 %v238_v30, %v230_v31 }
  0xbc   :  { %254 = vst.msk [vmem:[%s512_s5 + $0x38] sm:$0xff] %vm24_vm0, %v246_v32 }

</bundles_post_ra>
